<compile_context>
chip_gen: v7x
topology: tpu7x:2x2x1
jax: 0.10.0
libtpu: 0.0.40
codegen_flags: <defaults>
</compile_context>

<pallas_src>
import functools
import math

import jax
import jax.numpy as jnp
import numpy as np
from jax.experimental import pallas as pl
from jax.experimental.pallas import tpu as pltpu

PI_TORCH = 3.14159265  # constant used by the reference PyTorch code
_EPS = 1e-12           # F.normalize default eps


def _round_up(n, mult):
    return ((n + mult - 1) // mult) * mult


def _pow2_divisor(n):
    return n & (-n)


def _cos_m_theta(x, m):
    """mlambda[m] from the PyTorch module (Chebyshev polynomial of cos)."""
    if m == 0:
        return jnp.ones_like(x)
    if m == 1:
        return x
    if m == 2:
        return 2.0 * x * x - 1.0
    if m == 3:
        return 4.0 * x * x * x - 3.0 * x
    if m == 4:
        x2 = x * x
        return 8.0 * x2 * x2 - 8.0 * x2 + 1.0
    if m == 5:
        x2 = x * x
        return 16.0 * x2 * x2 * x - 20.0 * x2 * x + 5.0 * x
    raise ValueError("m must be in 0..5")


def _sphere_kernel(x_ref, w_ref, label_ref, out_ref, wn_ref, *,
                   m, inv_one_plus_lamb, tile_o, tile_b, x_resident):
    o_idx = pl.program_id(0)   # class-tile index (outer; W tile resident)
    b_idx = pl.program_id(1)   # batch-tile index (inner)

    # --- Hoisted weight normalization: once per O tile, kept in persistent VMEM
    #     scratch while the W block stays resident across the inner B loop.  Safe
    #     because the B axis is "arbitrary" (never sharded across cores). ---
    @pl.when(b_idx == 0)
    def _():
        wf = w_ref[...].astype(jnp.float32)                      # (TILE_O, D)
        w_ssq = jnp.sum(wf * wf, axis=1, keepdims=True)          # (TILE_O, 1)
        inv_w = jax.lax.rsqrt(jnp.maximum(w_ssq, _EPS * _EPS))   # 1 / max(||w||, eps)
        wn_ref[...] = (wf * inv_w).astype(wn_ref.dtype)

    # --- Current batch tile of x (resident full x in VMEM, or streamed per step). ---
    if x_resident:
        row0 = pl.multiple_of(b_idx * tile_b, _pow2_divisor(tile_b))
        xf = x_ref[pl.ds(row0, tile_b), :].astype(jnp.float32)   # (TILE_B, D)
    else:
        xf = x_ref[...].astype(jnp.float32)                      # (TILE_B, D)

    # Row-normalize this batch tile (rsqrt multiply, no divide).
    x_ssq = jnp.sum(xf * xf, axis=1, keepdims=True)              # (TILE_B, 1)
    x_norm = jnp.sqrt(x_ssq)                                     # unclamped ||x|| (NormOfFeature)
    inv_x = jax.lax.rsqrt(jnp.maximum(x_ssq, _EPS * _EPS))       # 1 / max(||x||, eps)
    xn = (xf * inv_x).astype(wn_ref.dtype)                       # MXU operand dtype

    # cos_theta = normalize(x) @ normalize(W)^T; contract dim 1 of BOTH operands so
    # the MXU consumes W in its native (O, D) layout (no transpose).
    cos = jax.lax.dot_general(
        xn, wn_ref[...],
        dimension_numbers=(((1,), (1,)), ((), ())),
        preferred_element_type=jnp.float32)                      # (TILE_B, TILE_O) f32
    cos = jnp.clip(cos, -1.0, 1.0)

    # --- Per-row margin epilogue: only the label column gets the SphereFace margin. ---
    col = o_idx * tile_o + jax.lax.broadcasted_iota(jnp.int32, cos.shape, 1)
    is_label = col == label_ref[...]                             # (TILE_B, TILE_O), <=1 hit/row

    # Label-column cos extracted with one select + lane reduce (XLU).  Zero (and unused)
    # when this row's label is not inside this O tile.
    cos_lab = jnp.sum(jnp.where(is_label, cos, 0.0), axis=1, keepdims=True)  # (TILE_B, 1)

    # phi = (-1)**k * cos_m_theta - 2k with k = floor(m*acos(cos)/PI_TORCH), computed on
    # the (TILE_B, 1) column via a fused monotone-threshold select chain (acos is
    # monotone decreasing, so k >= j  <=>  cos <= cos(j*PI_TORCH/m); the largest
    # satisfied j wins).
    cos_m = _cos_m_theta(cos_lab, m)
    phi = cos_m
    for j in range(1, m + 1):
        thr = np.float32(math.cos(j * PI_TORCH / m))
        phi = jnp.where(cos_lab <= thr,
                        np.float32((-1.0) ** j) * cos_m - np.float32(2.0 * j),
                        phi)

    corr = (phi - cos_lab) * np.float32(inv_one_plus_lamb) * x_norm   # (TILE_B, 1)
    out = cos * x_norm + jnp.where(is_label, corr, 0.0)
    out_ref[...] = out.astype(out_ref.dtype)


def _pick_tile_o(O, cap):
    """Choose (tile_o, padded_O), preferring a divisor of O (no weight pad copy)."""
    cap = max(128, (max(min(cap, 4096), 128) // 128) * 128)
    if O <= cap:
        # Prefer >=2 O tiles when cheap so the "parallel" O axis can shard across both
        # TensorCores on megacore parts (v7x / v4 / v5p).
        if O >= 256 and O % 256 == 0:
            return O // 2, O
        return O, O
    t = cap
    while t >= 128:
        if O % t == 0:
            return t, O
        t -= 128
    return cap, _round_up(O, cap)


def _pick_tile_b(B, cap):
    """Choose (tile_b, padded_B), preferring a divisor of B."""
    cap = max(8, (max(min(cap, 2048), 8) // 8) * 8)
    if B <= cap:
        return B, B
    t = cap
    while t >= 8:
        if B % t == 0:
            return t, B
        t -= 8
    return cap, _round_up(B, cap)


def sphere_product(x, weight, label, *, m=4, iteration=1,
                   tile_b=None, tile_o=None, mxu_dtype=jnp.bfloat16, x_resident=None):
    """Pallas forward of SphereProduct.

    `iteration` is the value of self.iter AFTER the increment inside forward
    (first call -> 1).  `mxu_dtype` (default bf16) is the MXU operand dtype for the
    weight stream / dot; x stays in its own dtype so ||x|| keeps full precision.
    `mxu_dtype=None` keeps everything in the input dtype (f32 path).
    """
    # TODO(synk): self.iter is mutable Python-side module state; it is passed in
    # explicitly as `iteration` instead of being tracked inside the kernel.
    if not 0 <= m <= 5:
        raise ValueError("m must be in 0..5")
    base, gamma, power, lambda_min = 1000.0, 0.12, 1, 5.0
    lamb = max(lambda_min, base * (1.0 + gamma * iteration) ** (-power))
    inv_one_plus_lamb = 1.0 / (1.0 + lamb)

    B, D = x.shape
    O = weight.shape[0]

    # Only the weight (the dominant HBM stream) is quantized for the MXU.
    if mxu_dtype is not None and weight.dtype != mxu_dtype:
        # TODO(synk): in production keep the parameter stored in mxu_dtype so this
        # per-call cast (an extra O*D HBM copy) disappears.
        weight = weight.astype(mxu_dtype)

    tile_o, Op = _pick_tile_o(O, 512 if tile_o is None else tile_o)
    tile_b, Bp = _pick_tile_b(B, 256 if tile_b is None else tile_b)

    if Bp != B:
        x = jnp.pad(x, ((0, Bp - B), (0, 0)))
        label = jnp.pad(label, (0, Bp - B))
    if Op != O:
        # Only hit when no multiple-of-128 tile divides O.
        # TODO(synk): pad the parameter once at init to avoid this per-call O*D copy.
        weight = jnp.pad(weight, ((0, Op - O), (0, 0)))
    label2d = label.reshape(Bp, 1).astype(jnp.int32)

    x_bytes = jnp.dtype(x.dtype).itemsize
    w_bytes = jnp.dtype(weight.dtype).itemsize

    if x_resident is None:
        x_resident = Bp * D * x_bytes <= 4 * 1024 * 1024

    grid = (Op // tile_o, Bp // tile_b)   # O outer (weight tile resident), B inner

    if x_resident:
        x_spec = pl.BlockSpec((Bp, D), lambda o, b: (0, 0))       # one DMA, resident
        x_vmem = 2 * Bp * D * x_bytes
    else:
        x_spec = pl.BlockSpec((tile_b, D), lambda o, b: (b, 0))   # streamed along B
        x_vmem = 2 * tile_b * D * x_bytes

    # Rough VMEM need: x buffers + double-buffered W + normalized-W scratch +
    # double-buffered output + label blocks + a few f32 (TILE_B, TILE_O) temporaries.
    vmem_est = (x_vmem
                + 3 * tile_o * D * w_bytes
                + 2 * tile_b * tile_o * 4
                + 2 * tile_b * 4
                + 4 * tile_b * tile_o * 4)
    # Always set an explicit scoped-VMEM limit (v5e default is 16 MiB) with headroom,
    # and never claim the full 64 MiB physical VMEM of v7x.
    vmem_limit = int(min(48 * 1024 * 1024, max(32 * 1024 * 1024, int(1.5 * vmem_est))))

    kernel = functools.partial(
        _sphere_kernel, m=m, inv_one_plus_lamb=float(inv_one_plus_lamb),
        tile_o=tile_o, tile_b=tile_b, x_resident=x_resident)

    out = pl.pallas_call(
        kernel,
        out_shape=jax.ShapeDtypeStruct((Bp, Op), jnp.float32),
        grid_spec=pltpu.PrefetchScalarGridSpec(
            num_scalar_prefetch=0,
            grid=grid,
            in_specs=[
                x_spec,                                              # x
                pl.BlockSpec((tile_o, D), lambda o, b: (o, 0)),      # W: O axis only (resident over b)
                pl.BlockSpec((tile_b, 1), lambda o, b: (b, 0)),      # labels: B axis only
            ],
            out_specs=pl.BlockSpec((tile_b, tile_o), lambda o, b: (b, o)),
            scratch_shapes=[pltpu.VMEM((tile_o, D), weight.dtype)],  # normalized W tile
        ),
        compiler_params=pltpu.CompilerParams(
            dimension_semantics=("parallel", "arbitrary"),
            vmem_limit_bytes=vmem_limit,
        ),
        cost_estimate=pl.CostEstimate(
            flops=2 * Bp * Op * D,
            transcendentals=2 * Bp * (Op // tile_o) + Op,
            bytes_accessed=((1 if x_resident else (Op // tile_o)) * Bp * D * x_bytes
                            + Op * D * w_bytes + Bp * Op * 4 + Bp * 4),
        ),
    )(x, weight, label2d)

    return out[:B, :O]


_MLAMBDA = [
    lambda x: x ** 0,
    lambda x: x ** 1,
    lambda x: 2 * x ** 2 - 1,
    lambda x: 4 * x ** 3 - 3 * x,
    lambda x: 8 * x ** 4 - 8 * x ** 2 + 1,
    lambda x: 16 * x ** 5 - 20 * x ** 3 + 5 * x,
]


def _reference(x, weight, label, *, m=4, iteration=1):
    """Pure numpy mirror of the PyTorch forward."""
    base, gamma, power, lambda_min = 1000.0, 0.12, 1, 5.0
    lamb = max(lambda_min, base * (1.0 + gamma * iteration) ** (-power))
    x = np.asarray(x, np.float32)
    w = np.asarray(weight, np.float32)
    lbl = np.asarray(label)
    xn = x / np.maximum(np.linalg.norm(x, axis=1, keepdims=True), 1e-12)
    wn = w / np.maximum(np.linalg.norm(w, axis=1, keepdims=True), 1e-12)
    cos = np.clip(xn @ wn.T, -1.0, 1.0)
    cmt = _MLAMBDA[m](cos)
    theta = np.arccos(cos)
    k = np.floor(m * theta / PI_TORCH)
    phi = (-1.0) ** k * cmt - 2 * k
    norm_feat = np.linalg.norm(x, axis=1, keepdims=True)
    one_hot = np.zeros_like(cos)
    one_hot[np.arange(x.shape[0]), lbl] = 1.0
    out = one_hot * (phi - cos) / (1 + lamb) + cos
    return out * norm_feat


if __name__ == "__main__":
    m = 4

    # ---- Test 1: module-scale toy shape, f32 MXU path, single-tile grid, resident x. ----
    B, D, O = 8, 32, 16
    kx, kw, kl = jax.random.split(jax.random.PRNGKey(0), 3)
    x = jax.random.normal(kx, (B, D), dtype=jnp.float32)
    bound = math.sqrt(6.0 / (D + O))  # deterministic xavier_uniform-style init
    w = jax.random.uniform(kw, (O, D), dtype=jnp.float32, minval=-bound, maxval=bound)
    label = jax.random.randint(kl, (B,), 0, O, dtype=jnp.int32)

    out = jax.block_until_ready(
        sphere_product(x, w, label, m=m, iteration=1, mxu_dtype=None))
    ref = _reference(np.asarray(x), np.asarray(w), np.asarray(label), m=m, iteration=1)
    np.testing.assert_allclose(np.asarray(out), ref, rtol=1e-2, atol=1e-2)

    # ---- Test 2: multi-tile (3x3) grid, f32, streamed-x path, lamb at LambdaMin so
    #      the one-hot margin path (global class column across O tiles) is exercised. ----
    B2, D2, O2, it2 = 48, 64, 384, 2000   # iteration=2000 -> lamb = LambdaMin = 5.0
    k2x, k2w = jax.random.split(jax.random.fold_in(jax.random.PRNGKey(0), 7), 2)
    x2 = jax.random.normal(k2x, (B2, D2), dtype=jnp.float32)
    bound2 = math.sqrt(6.0 / (D2 + O2))
    w2 = jax.random.uniform(k2w, (O2, D2), dtype=jnp.float32, minval=-bound2, maxval=bound2)
    # Pick each row's label as the class whose cos_theta is farthest from every
    # k-threshold so the margin branch is numerically unambiguous for the check.
    xn2 = np.asarray(x2) / np.linalg.norm(np.asarray(x2), axis=1, keepdims=True)
    wn2 = np.asarray(w2) / np.linalg.norm(np.asarray(w2), axis=1, keepdims=True)
    cos2 = xn2 @ wn2.T
    thr = np.array([math.cos(j * PI_TORCH / m) for j in range(1, m + 1)], np.float32)
    dist = np.min(np.abs(cos2[:, :, None] - thr[None, None, :]), axis=-1)
    label2 = jnp.asarray(np.argmax(dist, axis=1).astype(np.int32))

    out2 = jax.block_until_ready(
        sphere_product(x2, w2, label2, m=m, iteration=it2, tile_b=16, tile_o=128,
                       mxu_dtype=None, x_resident=False))
    ref2 = _reference(np.asarray(x2), np.asarray(w2), np.asarray(label2), m=m, iteration=it2)
    np.testing.assert_allclose(np.asarray(out2), ref2, rtol=5e-2, atol=1e-1)

    # ---- Test 3: same problem on the default bf16 MXU path (f32 x / f32 accumulation),
    #      resident-x, auto tile selection. ----
    out3 = jax.block_until_ready(
        sphere_product(x2, w2, label2, m=m, iteration=it2))
    np.testing.assert_allclose(np.asarray(out3), ref2, rtol=5e-2, atol=2e-1)

    print("KERNEL_OK")
</pallas_src>

<mosaic_0001>
module attributes {stable_mosaic.version = 11 : i64} {
  func.func @_sphere_kernel(%arg0: i32, %arg1: i32, %arg2: memref<8x32xf32, #tpu.memory_space<vmem>>, %arg3: memref<16x32xf32, #tpu.memory_space<vmem>>, %arg4: memref<8x1xi32, #tpu.memory_space<vmem>>, %arg5: memref<8x16xf32, #tpu.memory_space<vmem>>, %arg6: memref<16x32xf32, #tpu.memory_space<vmem>>) attributes {dimension_semantics = [#tpu.dimension_semantics<parallel>, #tpu.dimension_semantics<arbitrary>], iteration_bounds = array<i64: 1, 1>, scalar_prefetch = 0 : i64, scratch_operands = 1 : i64, tpu.core_type = #tpu.core_type<tc>, window_params = [{pipeline_mode = #tpu.pipeline_mode<synchronous>, transform_indices = @transform_0, window_bounds = array<i64: 8, 32>}, {transform_indices = @transform_1, window_bounds = array<i64: 16, 32>}, {transform_indices = @transform_2, window_bounds = array<i64: 8, 1>}, {transform_indices = @transform_3, window_bounds = array<i64: 8, 16>}]} {
    %c0_i32 = arith.constant 0 : i32
    %0 = arith.cmpi eq, %arg1, %c0_i32 : i32
    %1 = arith.extui %0 : i1 to i32
    %c0_i32_0 = arith.constant 0 : i32
    %2 = arith.cmpi ne, %1, %c0_i32_0 : i32
    scf.if %2 {
      %c0_30 = arith.constant 0 : index
      %c0_31 = arith.constant 0 : index
      %82 = vector.load %arg3[%c0_30, %c0_31] : memref<16x32xf32, #tpu.memory_space<vmem>>, vector<16x32xf32>
      %83 = arith.mulf %82, %82 : vector<16x32xf32>
      %cst_32 = arith.constant dense<0.000000e+00> : vector<16xf32>
      %84 = vector.multi_reduction <add>, %83, %cst_32 [1] : vector<16x32xf32> to vector<16xf32>
      %85 = vector.shape_cast %84 : vector<16xf32> to vector<16x1xf32>
      %cst_33 = arith.constant 1.000000e-24 : f32
      %86 = vector.broadcast %cst_33 : f32 to vector<16x1xf32>
      %87 = arith.maximumf %85, %86 : vector<16x1xf32>
      %88 = math.rsqrt %87 : vector<16x1xf32>
      %89 = vector.broadcast %88 : vector<16x1xf32> to vector<16x32xf32>
      %90 = arith.mulf %82, %89 : vector<16x32xf32>
      %c0_34 = arith.constant 0 : index
      %c0_35 = arith.constant 0 : index
      %91 = vector.load %arg6[%c0_34, %c0_35] : memref<16x32xf32, #tpu.memory_space<vmem>>, vector<16x32xf32>
      tpu.vector_store %arg6[%c0_34, %c0_35], %90 {strides = array<i32>} : memref<16x32xf32, #tpu.memory_space<vmem>>, vector<16x32xf32>,
    } else {
    }
    %c8_i32 = arith.constant 8 : i32
    %3 = arith.muli %arg1, %c8_i32 : i32
    %4 = tpu.assume_multiple %3, 8 : i32
    %5 = arith.index_cast %4 : i32 to index
    %c0 = arith.constant 0 : index
    %6 = vector.load %arg2[%5, %c0] : memref<8x32xf32, #tpu.memory_space<vmem>>, vector<8x32xf32>
    %7 = arith.mulf %6, %6 : vector<8x32xf32>
    %cst = arith.constant dense<0.000000e+00> : vector<8xf32>
    %8 = vector.multi_reduction <add>, %7, %cst [1] : vector<8x32xf32> to vector<8xf32>
    %9 = vector.shape_cast %8 : vector<8xf32> to vector<8x1xf32>
    %10 = math.sqrt %9 : vector<8x1xf32>
    %cst_1 = arith.constant 1.000000e-24 : f32
    %11 = vector.broadcast %cst_1 : f32 to vector<8x1xf32>
    %12 = arith.maximumf %9, %11 : vector<8x1xf32>
    %13 = math.rsqrt %12 : vector<8x1xf32>
    %14 = vector.broadcast %13 : vector<8x1xf32> to vector<8x32xf32>
    %15 = arith.mulf %6, %14 : vector<8x32xf32>
    %c0_2 = arith.constant 0 : index
    %c0_3 = arith.constant 0 : index
    %16 = vector.load %arg6[%c0_2, %c0_3] : memref<16x32xf32, #tpu.memory_space<vmem>>, vector<16x32xf32>
    %cst_4 = arith.constant dense<0.000000e+00> : vector<8x16xf32>
    %17 = tpu.matmul %15, %16, %cst_4 {dimension_numbers = #tpu.dot_dimension_numbers<[1], [1], [0], [0], [0, 0, 1, 0], [], []>} : vector<8x32xf32>, vector<16x32xf32>, vector<8x16xf32> -> vector<8x16xf32>
    %cst_5 = arith.constant -1.000000e+00 : f32
    %cst_6 = arith.constant 1.000000e+00 : f32
    %18 = vector.broadcast %cst_5 : f32 to vector<8x16xf32>
    %19 = arith.maximumf %18, %17 : vector<8x16xf32>
    %20 = vector.broadcast %cst_6 : f32 to vector<8x16xf32>
    %21 = arith.minimumf %20, %19 : vector<8x16xf32>
    %c16_i32 = arith.constant 16 : i32
    %22 = arith.muli %arg0, %c16_i32 : i32
    %23 = tpu.iota {dimensions = array<i32: 1>} : vector<8x16xi32>
    %24 = vector.broadcast %22 : i32 to vector<8x16xi32>
    %25 = arith.addi %24, %23 : vector<8x16xi32>
    %c0_7 = arith.constant 0 : index
    %c0_8 = arith.constant 0 : index
    %26 = vector.load %arg4[%c0_7, %c0_8] : memref<8x1xi32, #tpu.memory_space<vmem>>, vector<8x1xi32>
    %27 = vector.broadcast %26 : vector<8x1xi32> to vector<8x16xi32>
    %28 = arith.cmpi eq, %25, %27 : vector<8x16xi32>
    %cst_9 = arith.constant 0.000000e+00 : f32
    %29 = vector.broadcast %cst_9 : f32 to vector<8x16xf32>
    %30 = arith.select %28, %21, %29 : vector<8x16xi1>, vector<8x16xf32>
    %cst_10 = arith.constant dense<0.000000e+00> : vector<8xf32>
    %31 = vector.multi_reduction <add>, %30, %cst_10 [1] : vector<8x16xf32> to vector<8xf32>
    %32 = vector.shape_cast %31 : vector<8xf32> to vector<8x1xf32>
    %33 = arith.mulf %32, %32 : vector<8x1xf32>
    %cst_11 = arith.constant 8.000000e+00 : f32
    %34 = vector.broadcast %cst_11 : f32 to vector<8x1xf32>
    %35 = arith.mulf %34, %33 : vector<8x1xf32>
    %36 = arith.mulf %35, %33 : vector<8x1xf32>
    %cst_12 = arith.constant 8.000000e+00 : f32
    %37 = vector.broadcast %cst_12 : f32 to vector<8x1xf32>
    %38 = arith.mulf %37, %33 : vector<8x1xf32>
    %39 = arith.subf %36, %38 : vector<8x1xf32>
    %cst_13 = arith.constant 1.000000e+00 : f32
    %40 = vector.broadcast %cst_13 : f32 to vector<8x1xf32>
    %41 = arith.addf %39, %40 : vector<8x1xf32>
    %cst_14 = arith.constant 0.707106769 : f32
    %42 = vector.broadcast %cst_14 : f32 to vector<8x1xf32>
    %43 = arith.cmpf ole, %32, %42 : vector<8x1xf32>
    %cst_15 = arith.constant -1.000000e+00 : f32
    %44 = vector.broadcast %cst_15 : f32 to vector<8x1xf32>
    %45 = arith.mulf %44, %41 : vector<8x1xf32>
    %cst_16 = arith.constant 2.000000e+00 : f32
    %46 = vector.broadcast %cst_16 : f32 to vector<8x1xf32>
    %47 = arith.subf %45, %46 : vector<8x1xf32>
    %48 = arith.select %43, %47, %41 : vector<8x1xi1>, vector<8x1xf32>
    %cst_17 = arith.constant 1.79489656E-9 : f32
    %49 = vector.broadcast %cst_17 : f32 to vector<8x1xf32>
    %50 = arith.cmpf ole, %32, %49 : vector<8x1xf32>
    %cst_18 = arith.constant 1.000000e+00 : f32
    %51 = vector.broadcast %cst_18 : f32 to vector<8x1xf32>
    %52 = arith.mulf %51, %41 : vector<8x1xf32>
    %cst_19 = arith.constant 4.000000e+00 : f32
    %53 = vector.broadcast %cst_19 : f32 to vector<8x1xf32>
    %54 = arith.subf %52, %53 : vector<8x1xf32>
    %55 = arith.select %50, %54, %48 : vector<8x1xi1>, vector<8x1xf32>
    %cst_20 = arith.constant -0.707106769 : f32
    %56 = vector.broadcast %cst_20 : f32 to vector<8x1xf32>
    %57 = arith.cmpf ole, %32, %56 : vector<8x1xf32>
    %cst_21 = arith.constant -1.000000e+00 : f32
    %58 = vector.broadcast %cst_21 : f32 to vector<8x1xf32>
    %59 = arith.mulf %58, %41 : vector<8x1xf32>
    %cst_22 = arith.constant 6.000000e+00 : f32
    %60 = vector.broadcast %cst_22 : f32 to vector<8x1xf32>
    %61 = arith.subf %59, %60 : vector<8x1xf32>
    %62 = arith.select %57, %61, %55 : vector<8x1xi1>, vector<8x1xf32>
    %cst_23 = arith.constant -1.000000e+00 : f32
    %63 = vector.broadcast %cst_23 : f32 to vector<8x1xf32>
    %64 = arith.cmpf ole, %32, %63 : vector<8x1xf32>
    %cst_24 = arith.constant 1.000000e+00 : f32
    %65 = vector.broadcast %cst_24 : f32 to vector<8x1xf32>
    %66 = arith.mulf %65, %41 : vector<8x1xf32>
    %cst_25 = arith.constant 8.000000e+00 : f32
    %67 = vector.broadcast %cst_25 : f32 to vector<8x1xf32>
    %68 = arith.subf %66, %67 : vector<8x1xf32>
    %69 = arith.select %64, %68, %62 : vector<8x1xi1>, vector<8x1xf32>
    %70 = arith.subf %69, %32 : vector<8x1xf32>
    %cst_26 = arith.constant 0.00111874705 : f32
    %71 = vector.broadcast %cst_26 : f32 to vector<8x1xf32>
    %72 = arith.mulf %70, %71 : vector<8x1xf32>
    %73 = arith.mulf %72, %10 : vector<8x1xf32>
    %74 = vector.broadcast %10 : vector<8x1xf32> to vector<8x16xf32>
    %75 = arith.mulf %21, %74 : vector<8x16xf32>
    %cst_27 = arith.constant 0.000000e+00 : f32
    %76 = vector.shape_cast %73 : vector<8x1xf32> to vector<8x1xf32>
    %77 = vector.broadcast %76 : vector<8x1xf32> to vector<8x16xf32>
    %78 = vector.broadcast %cst_27 : f32 to vector<8x16xf32>
    %79 = arith.select %28, %77, %78 : vector<8x16xi1>, vector<8x16xf32>
    %80 = arith.addf %75, %79 : vector<8x16xf32>
    %c0_28 = arith.constant 0 : index
    %c0_29 = arith.constant 0 : index
    %81 = vector.load %arg5[%c0_28, %c0_29] : memref<8x16xf32, #tpu.memory_space<vmem>>, vector<8x16xf32>
    tpu.vector_store %arg5[%c0_28, %c0_29], %80 {strides = array<i32>} : memref<8x16xf32, #tpu.memory_space<vmem>>, vector<8x16xf32>,
    return
  }
  func.func @transform_0(%arg0: i32, %arg1: i32) -> (i32, i32) {
    %c0_i32 = arith.constant 0 : i32
    %c0_i32_0 = arith.constant 0 : i32
    %c0_i32_1 = arith.constant 0 : i32
    return %c0_i32, %c0_i32_0 : i32, i32
  }
  func.func @transform_1(%arg0: i32, %arg1: i32) -> (i32, i32) {
    %c0_i32 = arith.constant 0 : i32
    %c0_i32_0 = arith.constant 0 : i32
    return %arg0, %c0_i32 : i32, i32
  }
  func.func @transform_2(%arg0: i32, %arg1: i32) -> (i32, i32) {
    %c0_i32 = arith.constant 0 : i32
    %c0_i32_0 = arith.constant 0 : i32
    return %arg1, %c0_i32 : i32, i32
  }
  func.func @transform_3(%arg0: i32, %arg1: i32) -> (i32, i32) {
    %c0_i32 = arith.constant 0 : i32
    return %arg1, %arg0 : i32, i32
  }
}

</mosaic_0001>

<bundles_post_ra>
// kernel: tpu_custom_call.1
= control target key start
LH: loop header
LB: loop body
LE: loop exit
PB: predicated region body
PF: predicated region fallthrough
CT: control target
= control target key end

     0   :  { %8 = vsyncpa [#allocation4], 0  ;;  %s366_s0 = inlined_call_operand.vmem [shape: f32[8,32], index: 0, kind: input, shape index: {}]   ;;  %s367_s1 = inlined_call_operand.hbm [shape: f32[16,32], index: 1, kind: input, shape index: {}]   ;;  %s368_s2 = inlined_call_operand.vmem [shape: s32[8,1], index: 2, kind: input, shape index: {}]   ;;  %s369_s3 = inlined_call_operand.hbm [shape: f32[8,16], index: 3, kind: output, shape index: {}]  }
   0x1   :  { %9 = vsyncpa [#allocation5], 0  ;;  %s296_s12 = smov [#allocation3]   ;;  %s248_s16 = scalar_lea.hbm %s367_s1, 256 }
   0x2   :  { %s17_s13 = sshll.u32 %s296_s12, 4  ;;  %p249_p0 = scmp.ne.s32.totalorder %s367_s1, %s248_s16  ;;  %s18_s13 = int_to_ptr.vmem [resolvable:$true] %s17_s13 }
   0x3   :  { %p252_p1 = scmp.lt.u32.totalorder %s248_s16, %s367_s1 }
   0x5   :  { %p254_p2 = pnand %p252_p1, %p249_p0 }
   0x7   :  { %257 = shalt.err (!%p254_p2)
}
   0x8   :  { %s258_s21 = scalar_lea.vmem %s18_s13, 256  ;;  %p263_p4 = scmp.lt.s32.totalorder %s18_s13, %s18_s13 }
   0x9   :  { %p259_p3 = scmp.ne.s32.totalorder %s18_s13, %s258_s21  ;;  %p264_p5 = scmp.lt.s32.totalorder %s258_s21, %s258_s21 }
   0xb   :  { %p265_p6 = por %p264_p5, %p263_p4 }
   0xd   :  { %p266_p7 = pnand %p265_p6, %p259_p3 }
   0xf   :  { %269 = shalt.err (!%p266_p7)
}
  0x10   :  { %s297_s22 = smov 128   ;;  %s298_s23 = smov 8  }
  0x11   :  { %23 = dma.hbm_to_vmem [thread:$0]  %s367_s1, 256, %s18_s13, [#allocation4], %s297_s22, %s297_s22, %s298_s23  }
  0x12   :  { %292 = dma.done.wait [#allocation4], 256  }
  0x13   :  { %293 = vsyncadd [#allocation4], 4294967040  ;;  %v33_v0 = vld [vmem:[#allocation3] sm:$0xff]  ;;  %vm37_vm0 = vcmask 261120   ;;  %v34_v1 = vld [vmem:[#allocation3 + $0x8] sm:$0xff]  ;;  %v299_v9 = vmov 0.0|0.0   ;;  %v154_v28 = vlaneseq }
  0x14   :  { %v54_v2 = vld [vmem:[%s366_s0] sm:$0xff]  ;;  %v35_v3 = vmul.f32 %v33_v0, %v33_v0  ;;  %v36_v4 = vmul.f32 %v34_v1, %v34_v1  ;;  %226 = vmatprep.subr.bf16.mxu0 %v299_v9  ;;  %vm300_vm1 = vmmov 0   ;;  %v301_v10 = vmov 0.0   ;;  %vm228_vm2 = vmpackc.low %vm37_vm0, %vm37_vm0  ;;  %s303_s0 = smov [#allocation6]  }
  0x15   :  { %v55_v5 = vmul.f32 %v54_v2, %v54_v2  ;;  %223 = vmatprep.mubr.msk.f32.mxu0 %vm300_vm1, %v301_v10  ;;  %v158_v11 = vld [vmem:[%s368_s2] sm:$0xff]  ;;  %v302_v12 = vmov 0   ;;  %v155_v29 = vand.u32 127, %v154_v28  ;;  %vm164_vm4 = vcmask 130048   ;;  %s199_s2 = sshll.u32 %s303_s0, 4  ;;  %s200_s2 = int_to_ptr.vmem [resolvable:$true] %s199_s2 }
  0x16   :  { %v38_v6 = vsel %vm37_vm0, %v35_v3, 0.0  ;;  %v41_v8 = vsel %vm37_vm0, %v36_v4, 0.0  ;;  %238 = vset.pattern.permute.xlu1 %v302_v12  ;;  %239 = vset.pattern.permute.xlu0 %v302_v12  ;;  %s270_s29 = scalar_lea.vmem %s200_s2, 128  ;;  %p275_p9 = scmp.lt.s32.totalorder %s200_s2, %s200_s2 }
  0x17   :  { %v57_v7 = vsel %vm37_vm0, %v55_v5, 0.0  ;;  %39 = vadd.xlane.f32.xlu0 %v38_v6  ;;  %p271_p8 = scmp.ne.s32.totalorder %s200_s2, %s270_s29  ;;  %p276_p10 = scmp.lt.s32.totalorder %s270_s29, %s270_s29 }
  0x18   :  { %58 = vadd.xlane.f32.xlu1 %v57_v7 }
  0x19   :  { %p277_p11 = por %p276_p10, %p275_p9 }
  0x1b   :  { %42 = vadd.xlane.f32.xlu0 %v41_v8  ;;  %p278_p12 = pnand %p277_p11, %p271_p8 }
  0x29   :  { %160 = vperm.xlu1 %238, %v158_v11  }
  0xa4   :  { %v40_v13 = vpop.xlane.xlu0 %39 }
  0xa5   :  { %v44_v14 = vmax.f32 %v40_v13, 1e-24  ;;  %v59_v19 = vpop.xlane.xlu1 %58 }
  0xa6   :  { %v67_v20 = vmax.f32 %v59_v19, 1e-24  ;;  %vm62_vm7 = vcmp.eq.f32.partialorder %v59_v19, inf  ;;  %v65_v52 = vand.u32 2147483648, %v59_v19  ;;  %vm64_vm10 = vcmp.eq.f32.partialorder %v59_v19, 0.0 }
  0xa7   :  { %240 = vrsqrt.f32 %v44_v14 }
  0xa8   :  { %v43_v15 = vpop.xlane.xlu0 %42 }
  0xa9   :  { %v45_v16 = vmax.f32 %v43_v15, 1e-24  ;;  %v161_v30 = vpop.permute.xlu1 %160 }
  0xaa   :  { %vm162_vm3 = vcmp.eq.s32.totalorder %v155_v29, %v161_v30 }
  0xab   :  { %242 = vrsqrt.f32 %v45_v16 }
  0xac   :  { %244 = vrsqrt.f32 %v67_v20 }
  0xad   :  { %246 = vrsqrt.f32 %v59_v19 }
  0xb1   :  { %v241_v17 = vpop.eup %240 }
  0xb2   :  { %v48_v18 = vmul.f32 %v241_v17, %v33_v0 }
  0xb4   :  { %50 = vst.msk [vmem:[#allocation2] sm:$0xff] %vm37_vm0, %v48_v18 }
  0xb5   :  { %v243_v21 = vpop.eup %242 }
  0xb6   :  { %v49_v22 = vmul.f32 %v243_v21, %v34_v1  ;;  %v245_v26 = vpop.eup %244 }
  0xb7   :  { %v69_v27 = vmul.f32 %v245_v26, %v54_v2  ;;  %v247_v43 = vpop.eup %246 }
  0xb8   :  { %51 = vst.msk [vmem:[#allocation2 + $0x8] sm:$0xff] %vm37_vm0, %v49_v22  ;;  %v61_v46 = vmul.f32 %v247_v43, %v59_v19 }
  0xba   :  { %v63_v54 = vsel %vm62_vm7, %v59_v19, %v61_v46 }
  0xbb   :  { %v70_v23 = vld [vmem:[#allocation2] sm:$0xff]  ;;  %v66_v57 = vsel %vm64_vm10, %v65_v52, %v63_v54 }
  0xbf   :  { %v71_v24 = vld [vmem:[#allocation2 + $0x8] sm:$0xff] }
  0xc0   :  { %v227_v25 = vpack.c.bf16 %v71_v24, %v70_v23 }
  0xc2   :  { %229 = vmatpush3.bf16.xpose.msk.msra.mxu0 %vm228_vm2, %v227_v25 }
  0xc9   :  { %224 = vmatmul.mubr.msk.f32.vlgmr.msra.gmra.mrb[0].mxu0 %vm37_vm0, %v69_v27 }
 0x19c   :  { %v147_v31 = vpop.f32.mrb[0].mxu0 }
 0x19d   :  { %v211_v32 = vclamps-f32 %v147_v31, 1.0  ;;  %v225_v33 = vpop.f32.mrb[1].mxu0 }
 0x19f   :  { %v163_v34 = vsel %vm162_vm3, %v211_v32, 0.0  ;;  %v189_v59 = vmul.f32 %v211_v32, %v66_v57 }
 0x1a0   :  { %v165_v35 = vsel %vm164_vm4, %v163_v34, 0.0 }
 0x1a1   :  { %166 = vadd.xlane.f32.xlu0 %v165_v35 }
 0x22e   :  { %v167_v36 = vpop.xlane.xlu0 %166 }
 0x22f   :  { %v168_v37 = vmul.f32 %v167_v36, %v167_v36  ;;  %vm173_vm5 = vcmp.le.f32.partialorder %v167_v36, 0.70710677  ;;  %vm177_vm6 = vcmp.le.f32.partialorder %v167_v36, 1.7948966e-09  ;;  %vm180_vm8 = vcmp.le.f32.partialorder %v167_v36, -0.70710677 }
 0x230   :  { %vm183_vm9 = vcmp.le.f32.partialorder %v167_v36, -1.0 }
 0x231   :  { %v169_v38 = vmul.f32 8.0, %v168_v37 }
 0x233   :  { %v170_v39 = vmul.f32 %v169_v38, %v168_v37 }
 0x235   :  { %v171_v40 = vsub.f32 %v170_v39, %v169_v38 }
 0x237   :  { %v172_v41 = vadd.f32 1.0, %v171_v40 }
 0x239   :  { %v174_v42 = vmul.f32 -1.0, %v172_v41  ;;  %v213_v45 = vadd.f32 -4.0, %v172_v41  ;;  %v215_v50 = vadd.f32 -8.0, %v172_v41 }
 0x23b   :  { %v212_v44 = vadd.f32 -2.0, %v174_v42  ;;  %v214_v48 = vadd.f32 -6.0, %v174_v42 }
 0x23d   :  { %v176_v47 = vsel %vm173_vm5, %v212_v44, %v172_v41 }
 0x23e   :  { %v179_v49 = vsel %vm177_vm6, %v213_v45, %v176_v47 }
 0x23f   :  { %v182_v51 = vsel %vm180_vm8, %v214_v48, %v179_v49 }
 0x240   :  { %v185_v53 = vsel %vm183_vm9, %v215_v50, %v182_v51 }
 0x241   :  { %v186_v55 = vsub.f32 %v185_v53, %v167_v36 }
 0x243   :  { %v187_v56 = vmul.f32 0.001118747, %v186_v55 }
 0x245   :  { %v188_v58 = vmul.f32 %v187_v56, %v66_v57 }
 0x247   :  { %v190_v60 = vsel %vm162_vm3, %v188_v58, 0.0 }
 0x248   :  { %v191_v61 = vadd.f32 %v190_v60, %v189_v59 }
 0x24a   :  { %192 = vst.msk [vmem:[#allocation6] sm:$0xff] %vm164_vm4, %v191_v61 }
 0x24b   :  { %281 = shalt.err (!%p278_p12)
}
 0x24c   :  { %s282_s5 = scalar_lea.hbm %s369_s3, 128 }
 0x24d   :  { %p283_p13 = scmp.ne.s32.totalorder %s369_s3, %s282_s5  ;;  %p286_p0 = scmp.lt.u32.totalorder %s282_s5, %s369_s3 }
 0x24f   :  { %p288_p1 = pnand %p286_p0, %p283_p13 }
 0x251   :  { %291 = shalt.err (!%p288_p1)
}
 0x252   :  { %202 = dma.vmem_to_hbm [thread:$0]  %s200_s2, 128, %s369_s3, [#allocation5]  }
 0x253   :  { %294 = dma.done.wait [#allocation5], 128  }
 0x254   :  { %295 = vsyncadd [#allocation5], 4294967168 }
 0x255   :  { %206 = vsyncpa [#allocation4], 1 }
 0x256   :  { %207 = vsyncpa [#allocation5], 1 }

</bundles_post_ra>
